<compile_context>
chip_gen: v5e
topology: v5e:2x2
jax: 0.10.0
libtpu: 0.0.40
codegen_flags: <defaults>
</compile_context>

<pallas_src>
import math
import numpy as np

import jax
import jax.numpy as jnp
from jax import lax
from jax.experimental import pallas as pl
from jax.experimental.pallas import tpu as pltpu

INV_SQRT3 = float(1.0 / math.sqrt(3.0))
_EPS_UNEMBED = 1e-12   # epsilon in unembed_points
_EPS_NORM = 1e-12      # F.normalize default eps

_QC = INV_SQRT3                         # normalized ones_vec component
_QQ = 3.0 * _QC * _QC                   # ||q||^2  (== 1 up to roundoff)
_COEF = 2.0 * _QC * _QC / _QQ           # column-correction coefficient (== 2/3)


# ---------------------------------------------------------------------------
# Constant setup (matches FilterBankConstructor.__init__, computed in numpy)
# ---------------------------------------------------------------------------
def _rotation_from_two_points_np(p, q):
    """Double Householder reflection: returns R with R p = q (||p|| == ||q||)."""
    p = np.asarray(p, np.float32)
    q = np.asarray(q, np.float32)

    def reflection(S, u):
        v = (u @ S) / np.dot(u, u)
        return S - 2.0 * np.outer(u, v)

    S = reflection(np.eye(3, dtype=np.float32), p + q)
    return reflection(S, q)


def _tetra_rotations_np():
    verts = np.array([(1.0, 1, 1), (1, -1, -1), (-1, 1, -1), (-1, -1, 1)], np.float32)
    rots = [np.eye(3, dtype=np.float32)]
    rots += [_rotation_from_two_points_np(verts[0], v) for v in verts[1:]]
    return np.stack(rots)  # (4, 3, 3) -- the registered 'tetra_rotations' buffer


_TETRA = _tetra_rotations_np()


# ---------------------------------------------------------------------------
# Pallas kernel: per-point unembed -> normalize -> rotation-from-two-points ->
#                isom transform -> tetra filter-bank transforms (t = 1..3).
# All 3x3 math is fully unrolled; points are vectorized lane-major and the
# sublane axis is walked in 8-row chunks so the live set is ~25 vregs max.
# ---------------------------------------------------------------------------
def _filter_bank_kernel(sph_ref, out_ref):
    # sph_ref: (4, TR, 128)   components (x, y, z, last); points tiled (TR, 128)
    # out_ref: (18, TR, 128)  rows 0..8  : rotations_0 flattened row-major (3*i + j)
    #                         rows 9..17 : filter-bank xyz for tetra t=1..3 (9 + 3*(t-1) + i)
    n_chunks = sph_ref.shape[1] // 8

    def chunk(r, carry):
        sl = pl.ds(pl.multiple_of(r * 8, 8), 8)          # one (8,128) vreg per quantity
        s0 = sph_ref[0, sl, :]
        s1 = sph_ref[1, sl, :]
        s2 = sph_ref[2, sl, :]
        s4 = sph_ref[3, sl, :]

        # ---- unembed_points + F.normalize ----------------------------------
        # approx reciprocal (EUP slot): its positive scale error cancels exactly in the
        # normalization below; only sign(s4 + eps) survives.
        inv_denom = pl.reciprocal(s4 + _EPS_UNEMBED, approx=True)
        c0 = s0 * inv_denom
        c1 = s1 * inv_denom
        c2 = s2 * inv_denom
        nrm2 = c0 * c0 + c1 * c1 + c2 * c2
        inv_nrm = lax.rsqrt(jnp.maximum(nrm2, _EPS_NORM * _EPS_NORM))   # EUP rsqrt
        p0 = c0 * inv_nrm
        p1 = c1 * inv_nrm
        p2 = c2 * inv_nrm                                # centers_n

        # ---- compute_rotation_from_two_points(centers_n, ones) -------------
        # S = I - 2 u u^T / ||u||^2 ,  u = p + q   (S symmetric)
        u0 = p0 + _QC
        u1 = p1 + _QC
        u2 = p2 + _QC
        uu = u0 * u0 + u1 * u1 + u2 * u2
        # exact divide: uu -> 0 (center antipodal to (1,1,1)/sqrt(3)) is a genuine
        # singularity shared with the PyTorch reference; approx reciprocal is unsafe here.
        two_inv_uu = 2.0 / uu
        S00 = 1.0 - u0 * u0 * two_inv_uu
        S11 = 1.0 - u1 * u1 * two_inv_uu
        S22 = 1.0 - u2 * u2 * two_inv_uu
        S01 = -(u0 * u1) * two_inv_uu
        S02 = -(u0 * u2) * two_inv_uu
        S12 = -(u1 * u2) * two_inv_uu

        # R = S - 2 q (q^T S)/||q||^2 ; q = (qc,qc,qc) -> per-column correction.
        corr0 = _COEF * (S00 + S01 + S02)
        corr1 = _COEF * (S01 + S11 + S12)
        corr2 = _COEF * (S02 + S12 + S22)

        R = [[S00 - corr0, S01 - corr1, S02 - corr2],
             [S01 - corr0, S11 - corr1, S12 - corr2],
             [S02 - corr0, S12 - corr1, S22 - corr2]]

        # dense per-row (8,128) stores, no sublane-axis concatenate
        for i in range(3):
            for j in range(3):
                out_ref[3 * i + j, sl, :] = R[i][j]

        # ---- rotated_spheres xyz = R @ spheres[:3] --------------------------
        rx = [R[i][0] * s0 + R[i][1] * s1 + R[i][2] * s2 for i in range(3)]

        # ---- filter banks, tetra t = 1..3: fb_xyz = R^T @ (T_t @ rx) --------
        # (t = 0 is the identity tetra -> fb equals the input spheres; assembled in the
        #  wrapper, not written here. The s3/s4 tails are also assembled in the wrapper.)
        for t in range(1, 4):
            T = _TETRA[t]
            w = [float(T[i, 0]) * rx[0] + float(T[i, 1]) * rx[1] + float(T[i, 2]) * rx[2]
                 for i in range(3)]
            base = 9 + 3 * (t - 1)
            for i in range(3):
                out_ref[base + i, sl, :] = R[0][i] * w[0] + R[1][i] * w[1] + R[2][i] * w[2]

        return carry

    unroll = 2 if (n_chunks > 1 and n_chunks % 2 == 0) else None
    lax.fori_loop(0, n_chunks, chunk, 0, unroll=unroll)


# ---------------------------------------------------------------------------
# Wrapper (glue: padding, layout plumbing, reassembly to torch conventions)
# ---------------------------------------------------------------------------
def filter_bank_constructor(spheres, *, tile_n=32768):
    """spheres: (N, 5) float32  ->  (rotations_0 (N,3,3), filter_banks (4N,5,1))"""
    spheres = spheres.astype(jnp.float32)
    N = spheres.shape[0]

    # ---- tile selection -----------------------------------------------------
    # tiles are multiples of 1024 points (=> 8-sublane x 128-lane chunks in-kernel);
    # cap at 32768 pts/step so the double-buffered VMEM footprint (~5.5 MiB) stays well
    # under every chip's default scoped limit, and balance the tile across grid steps.
    n1024 = pl.cdiv(N, 1024) * 1024
    tile_cap = min(max(1024, (tile_n // 1024) * 1024), 32768)
    if n1024 >= 4 * 16384:
        min_steps = 4          # keep >=4 steps so both v7x TCs stay busy + DMA overlap
    elif n1024 >= 2 * 8192:
        min_steps = 2
    else:
        min_steps = 1
    n_steps = max(min_steps, pl.cdiv(n1024, tile_cap))
    tile_n = pl.cdiv(n1024 // 1024, n_steps) * 1024
    n_pad = pl.cdiv(N, tile_n) * tile_n

    if n_pad != N:
        # benign padding rows (center=(1,0,0), last coord=1): no div-by-zero / NaN
        pad_rows = jnp.tile(jnp.array([[1.0, 0.0, 0.0, 0.0, 1.0]], jnp.float32),
                            (n_pad - N, 1))
        spheres_p = jnp.concatenate([spheres, pad_rows], axis=0)
    else:
        spheres_p = spheres

    rows = n_pad // 128
    tr = tile_n // 128

    # kernel input: only the 4 components the math uses, (component, rows-of-128, 128)
    # layout so every per-component value in-kernel is a dense lane-major tile.
    # TODO(synk): this transpose (and the output one below) is wrapper-side XLA layout
    # plumbing; a consumer that accepts the (component, N) layout should skip it.
    sph4 = jnp.concatenate([spheres_p[:, :3], spheres_p[:, 4:5]],
                           axis=1).T.reshape(4, rows, 128)

    out3 = pl.pallas_call(
        _filter_bank_kernel,
        out_shape=jax.ShapeDtypeStruct((18, rows, 128), jnp.float32),
        grid_spec=pltpu.PrefetchScalarGridSpec(
            num_scalar_prefetch=0,
            grid=(n_pad // tile_n,),
            in_specs=[pl.BlockSpec((4, tr, 128), lambda i: (0, i, 0))],
            out_specs=pl.BlockSpec((18, tr, 128), lambda i: (0, i, 0))),
        compiler_params=pltpu.CompilerParams(
            dimension_semantics=("parallel",)),
    )(sph4)

    # ---- reassemble PyTorch conventions -------------------------------------
    rotations_0 = out3[:9].reshape(9, n_pad).T[:N].reshape(N, 3, 3)
    fb9 = out3[9:].reshape(9, n_pad).T[:N].reshape(N, 3, 3)       # (N, t-1, xyz)
    # t = 0 tetra is the identity: R^T I R s == s (up to roundoff) -> use the input.
    first3 = jnp.concatenate([spheres[:, None, :3], fb9], axis=1)  # (N, 4, 3)
    tail = jnp.broadcast_to(spheres[:, None, 3:5], (N, 4, 2))      # s3, s4 unchanged
    filter_banks = (jnp.concatenate([first3, tail], axis=2)
                    .reshape(4 * N, 5)[..., None])
    return rotations_0, filter_banks


# ---------------------------------------------------------------------------
# Pure-numpy reference (mirrors the PyTorch forward) for a correctness check
# ---------------------------------------------------------------------------
def _reference_np(spheres_np, tetra_np):
    sph = spheres_np.astype(np.float32)
    N = sph.shape[0]
    centers = sph[:, :3] / (sph[:, 4:5] + _EPS_UNEMBED)
    nrm = np.maximum(np.linalg.norm(centers, axis=1, keepdims=True), _EPS_NORM)
    p = centers / nrm
    q = np.full((N, 3), INV_SQRT3, np.float32)

    def reflection(S, u):
        v = np.einsum('ni,nij->nj', u, S) / np.sum(u * u, axis=1, keepdims=True)
        return S - 2.0 * np.einsum('ni,nj->nij', u, v)

    I3 = np.tile(np.eye(3, dtype=np.float32), (N, 1, 1))
    S = reflection(I3, p + q)
    R = reflection(S, q)

    rot3 = np.einsum('nij,nj->ni', R, sph[:, :3])
    rotated = np.concatenate([rot3, sph[:, 3:]], axis=1)          # isom(R) @ sph

    M = np.einsum('nki,tkj->ntij', R, tetra_np)                   # R^T @ T_t
    fb3 = np.einsum('ntij,nj->nti', M, rotated[:, :3])
    tail = np.tile(rotated[:, None, 3:], (1, 4, 1))
    fb = np.concatenate([fb3, tail], axis=2).reshape(4 * N, 5, 1)
    return R, fb


if __name__ == "__main__":
    # TODO(synk): the `use_prev_init_rotations` / `prev_rotation_0` branch (off by
    # default) and the unused matrix_exp/cross_operator helpers are not implemented.
    def make_spheres(key, n, positive_centers=False):
        k1, k2 = jax.random.split(key)
        head = jax.random.normal(k1, (n, 4), jnp.float32)
        if positive_centers:
            head = head.at[:, :3].set(jnp.abs(head[:, :3]) + 0.05)
        last = jax.random.uniform(k2, (n, 1), jnp.float32, minval=0.5, maxval=1.5)
        return jnp.concatenate([head, last], axis=1)  # (n, 5)

    # small shape (single padded tile, single in-kernel chunk)
    N = 8
    spheres = make_spheres(jax.random.PRNGKey(0), N)
    rotations_0, filter_banks = filter_bank_constructor(spheres)
    jax.block_until_ready((rotations_0, filter_banks))
    assert rotations_0.shape == (N, 3, 3)
    assert filter_banks.shape == (4 * N, 5, 1)
    R_ref, fb_ref = _reference_np(np.asarray(spheres), _TETRA)
    assert np.allclose(np.asarray(rotations_0), R_ref, atol=1e-4, rtol=1e-4)
    assert np.allclose(np.asarray(filter_banks), fb_ref, atol=1e-4, rtol=1e-4)

    # multi-step grid with small explicit tiles; N not 128-aligned.
    # (slightly looser tolerance: near-antipodal centers amplify f32/EUP rounding diffs
    #  vs the numpy exact-divide path; both implementations share that conditioning)
    N2 = 2500
    spheres2 = make_spheres(jax.random.PRNGKey(1), N2)
    rot2, fb2 = filter_bank_constructor(spheres2, tile_n=1024)
    jax.block_until_ready((rot2, fb2))
    R2_ref, fb2_ref = _reference_np(np.asarray(spheres2), _TETRA)
    assert np.allclose(np.asarray(rot2), R2_ref, atol=2e-4, rtol=2e-4)
    assert np.allclose(np.asarray(fb2), fb2_ref, atol=2e-4, rtol=2e-4)

    # default large-tile path: multi-step grid + in-kernel 8-sublane chunk loop.
    # well-conditioned centers (positive octant) so the comparison stays tight.
    N3 = 70000
    spheres3 = make_spheres(jax.random.PRNGKey(2), N3, positive_centers=True)
    rot3, fb3 = filter_bank_constructor(spheres3)
    jax.block_until_ready((rot3, fb3))
    R3_ref, fb3_ref = _reference_np(np.asarray(spheres3), _TETRA)
    assert np.allclose(np.asarray(rot3), R3_ref, atol=1e-4, rtol=1e-4)
    assert np.allclose(np.asarray(fb3), fb3_ref, atol=1e-4, rtol=1e-4)

    print("KERNEL_OK")
</pallas_src>

<mosaic_0001>
module attributes {stable_mosaic.version = 11 : i64} {
  func.func @_filter_bank_kernel(%arg0: i32, %arg1: memref<4x8x128xf32, #tpu.memory_space<vmem>>, %arg2: memref<18x8x128xf32, #tpu.memory_space<vmem>>) attributes {dimension_semantics = [#tpu.dimension_semantics<parallel>], iteration_bounds = array<i64: 1>, scalar_prefetch = 0 : i64, scratch_operands = 0 : i64, tpu.core_type = #tpu.core_type<tc>, window_params = [{transform_indices = @transform_0, window_bounds = array<i64: 4, 8, 128>}, {transform_indices = @transform_1, window_bounds = array<i64: 18, 8, 128>}]} {
    %c0_i32 = arith.constant 0 : i32
    %c8_i32 = arith.constant 8 : i32
    %0 = arith.muli %c0_i32, %c8_i32 : i32
    %1 = tpu.assume_multiple %0, 8 : i32
    %c0 = arith.constant 0 : index
    %2 = arith.index_cast %1 : i32 to index
    %c0_0 = arith.constant 0 : index
    %3 = vector.load %arg1[%c0, %2, %c0_0] : memref<4x8x128xf32, #tpu.memory_space<vmem>>, vector<1x8x128xf32>
    %4 = vector.shape_cast %3 : vector<1x8x128xf32> to vector<8x128xf32>
    %c1 = arith.constant 1 : index
    %5 = arith.index_cast %1 : i32 to index
    %c0_1 = arith.constant 0 : index
    %6 = vector.load %arg1[%c1, %5, %c0_1] : memref<4x8x128xf32, #tpu.memory_space<vmem>>, vector<1x8x128xf32>
    %7 = vector.shape_cast %6 : vector<1x8x128xf32> to vector<8x128xf32>
    %c2 = arith.constant 2 : index
    %8 = arith.index_cast %1 : i32 to index
    %c0_2 = arith.constant 0 : index
    %9 = vector.load %arg1[%c2, %8, %c0_2] : memref<4x8x128xf32, #tpu.memory_space<vmem>>, vector<1x8x128xf32>
    %10 = vector.shape_cast %9 : vector<1x8x128xf32> to vector<8x128xf32>
    %c3 = arith.constant 3 : index
    %11 = arith.index_cast %1 : i32 to index
    %c0_3 = arith.constant 0 : index
    %12 = vector.load %arg1[%c3, %11, %c0_3] : memref<4x8x128xf32, #tpu.memory_space<vmem>>, vector<1x8x128xf32>
    %13 = vector.shape_cast %12 : vector<1x8x128xf32> to vector<8x128xf32>
    %cst = arith.constant 9.99999996E-13 : f32
    %14 = vector.broadcast %cst : f32 to vector<8x128xf32>
    %15 = arith.addf %13, %14 : vector<8x128xf32>
    %16 = tpu.reciprocal %15 {approx = true} : vector<8x128xf32> -> vector<8x128xf32>
    %17 = arith.mulf %4, %16 : vector<8x128xf32>
    %18 = arith.mulf %7, %16 : vector<8x128xf32>
    %19 = arith.mulf %10, %16 : vector<8x128xf32>
    %20 = arith.mulf %17, %17 : vector<8x128xf32>
    %21 = arith.mulf %18, %18 : vector<8x128xf32>
    %22 = arith.addf %20, %21 : vector<8x128xf32>
    %23 = arith.mulf %19, %19 : vector<8x128xf32>
    %24 = arith.addf %22, %23 : vector<8x128xf32>
    %cst_4 = arith.constant 1.000000e-24 : f32
    %25 = vector.broadcast %cst_4 : f32 to vector<8x128xf32>
    %26 = arith.maximumf %24, %25 : vector<8x128xf32>
    %27 = math.rsqrt %26 : vector<8x128xf32>
    %28 = arith.mulf %17, %27 : vector<8x128xf32>
    %29 = arith.mulf %18, %27 : vector<8x128xf32>
    %30 = arith.mulf %19, %27 : vector<8x128xf32>
    %cst_5 = arith.constant 0.577350259 : f32
    %31 = vector.broadcast %cst_5 : f32 to vector<8x128xf32>
    %32 = arith.addf %28, %31 : vector<8x128xf32>
    %cst_6 = arith.constant 0.577350259 : f32
    %33 = vector.broadcast %cst_6 : f32 to vector<8x128xf32>
    %34 = arith.addf %29, %33 : vector<8x128xf32>
    %cst_7 = arith.constant 0.577350259 : f32
    %35 = vector.broadcast %cst_7 : f32 to vector<8x128xf32>
    %36 = arith.addf %30, %35 : vector<8x128xf32>
    %37 = arith.mulf %32, %32 : vector<8x128xf32>
    %38 = arith.mulf %34, %34 : vector<8x128xf32>
    %39 = arith.addf %37, %38 : vector<8x128xf32>
    %40 = arith.mulf %36, %36 : vector<8x128xf32>
    %41 = arith.addf %39, %40 : vector<8x128xf32>
    %cst_8 = arith.constant 2.000000e+00 : f32
    %42 = vector.broadcast %cst_8 : f32 to vector<8x128xf32>
    %43 = arith.divf %42, %41 : vector<8x128xf32>
    %44 = arith.mulf %32, %32 : vector<8x128xf32>
    %45 = arith.mulf %44, %43 : vector<8x128xf32>
    %cst_9 = arith.constant 1.000000e+00 : f32
    %46 = vector.broadcast %cst_9 : f32 to vector<8x128xf32>
    %47 = arith.subf %46, %45 : vector<8x128xf32>
    %48 = arith.mulf %34, %34 : vector<8x128xf32>
    %49 = arith.mulf %48, %43 : vector<8x128xf32>
    %cst_10 = arith.constant 1.000000e+00 : f32
    %50 = vector.broadcast %cst_10 : f32 to vector<8x128xf32>
    %51 = arith.subf %50, %49 : vector<8x128xf32>
    %52 = arith.mulf %36, %36 : vector<8x128xf32>
    %53 = arith.mulf %52, %43 : vector<8x128xf32>
    %cst_11 = arith.constant 1.000000e+00 : f32
    %54 = vector.broadcast %cst_11 : f32 to vector<8x128xf32>
    %55 = arith.subf %54, %53 : vector<8x128xf32>
    %56 = arith.mulf %32, %34 : vector<8x128xf32>
    %cst_12 = arith.constant 0.000000e+00 : f32
    %57 = vector.broadcast %cst_12 : f32 to vector<8x128xf32>
    %58 = arith.subf %57, %56 : vector<8x128xf32>
    %59 = arith.mulf %58, %43 : vector<8x128xf32>
    %60 = arith.mulf %32, %36 : vector<8x128xf32>
    %cst_13 = arith.constant 0.000000e+00 : f32
    %61 = vector.broadcast %cst_13 : f32 to vector<8x128xf32>
    %62 = arith.subf %61, %60 : vector<8x128xf32>
    %63 = arith.mulf %62, %43 : vector<8x128xf32>
    %64 = arith.mulf %34, %36 : vector<8x128xf32>
    %cst_14 = arith.constant 0.000000e+00 : f32
    %65 = vector.broadcast %cst_14 : f32 to vector<8x128xf32>
    %66 = arith.subf %65, %64 : vector<8x128xf32>
    %67 = arith.mulf %66, %43 : vector<8x128xf32>
    %68 = arith.addf %47, %59 : vector<8x128xf32>
    %69 = arith.addf %68, %63 : vector<8x128xf32>
    %cst_15 = arith.constant 0.666666686 : f32
    %70 = vector.broadcast %cst_15 : f32 to vector<8x128xf32>
    %71 = arith.mulf %70, %69 : vector<8x128xf32>
    %72 = arith.addf %59, %51 : vector<8x128xf32>
    %73 = arith.addf %72, %67 : vector<8x128xf32>
    %cst_16 = arith.constant 0.666666686 : f32
    %74 = vector.broadcast %cst_16 : f32 to vector<8x128xf32>
    %75 = arith.mulf %74, %73 : vector<8x128xf32>
    %76 = arith.addf %63, %67 : vector<8x128xf32>
    %77 = arith.addf %76, %55 : vector<8x128xf32>
    %cst_17 = arith.constant 0.666666686 : f32
    %78 = vector.broadcast %cst_17 : f32 to vector<8x128xf32>
    %79 = arith.mulf %78, %77 : vector<8x128xf32>
    %80 = arith.subf %47, %71 : vector<8x128xf32>
    %81 = arith.subf %59, %75 : vector<8x128xf32>
    %82 = arith.subf %63, %79 : vector<8x128xf32>
    %83 = arith.subf %59, %71 : vector<8x128xf32>
    %84 = arith.subf %51, %75 : vector<8x128xf32>
    %85 = arith.subf %67, %79 : vector<8x128xf32>
    %86 = arith.subf %63, %71 : vector<8x128xf32>
    %87 = arith.subf %67, %75 : vector<8x128xf32>
    %88 = arith.subf %55, %79 : vector<8x128xf32>
    %c0_18 = arith.constant 0 : index
    %89 = arith.index_cast %1 : i32 to index
    %c0_19 = arith.constant 0 : index
    %90 = vector.load %arg2[%c0_18, %89, %c0_19] : memref<18x8x128xf32, #tpu.memory_space<vmem>>, vector<1x8x128xf32>
    %91 = vector.shape_cast %90 : vector<1x8x128xf32> to vector<8x128xf32>
    %92 = vector.shape_cast %80 : vector<8x128xf32> to vector<1x8x128xf32>
    tpu.vector_store %arg2[%c0_18, %89, %c0_19], %92 {strides = array<i32>} : memref<18x8x128xf32, #tpu.memory_space<vmem>>, vector<1x8x128xf32>,
    %c1_20 = arith.constant 1 : index
    %93 = arith.index_cast %1 : i32 to index
    %c0_21 = arith.constant 0 : index
    %94 = vector.load %arg2[%c1_20, %93, %c0_21] : memref<18x8x128xf32, #tpu.memory_space<vmem>>, vector<1x8x128xf32>
    %95 = vector.shape_cast %94 : vector<1x8x128xf32> to vector<8x128xf32>
    %96 = vector.shape_cast %81 : vector<8x128xf32> to vector<1x8x128xf32>
    tpu.vector_store %arg2[%c1_20, %93, %c0_21], %96 {strides = array<i32>} : memref<18x8x128xf32, #tpu.memory_space<vmem>>, vector<1x8x128xf32>,
    %c2_22 = arith.constant 2 : index
    %97 = arith.index_cast %1 : i32 to index
    %c0_23 = arith.constant 0 : index
    %98 = vector.load %arg2[%c2_22, %97, %c0_23] : memref<18x8x128xf32, #tpu.memory_space<vmem>>, vector<1x8x128xf32>
    %99 = vector.shape_cast %98 : vector<1x8x128xf32> to vector<8x128xf32>
    %100 = vector.shape_cast %82 : vector<8x128xf32> to vector<1x8x128xf32>
    tpu.vector_store %arg2[%c2_22, %97, %c0_23], %100 {strides = array<i32>} : memref<18x8x128xf32, #tpu.memory_space<vmem>>, vector<1x8x128xf32>,
    %c3_24 = arith.constant 3 : index
    %101 = arith.index_cast %1 : i32 to index
    %c0_25 = arith.constant 0 : index
    %102 = vector.load %arg2[%c3_24, %101, %c0_25] : memref<18x8x128xf32, #tpu.memory_space<vmem>>, vector<1x8x128xf32>
    %103 = vector.shape_cast %102 : vector<1x8x128xf32> to vector<8x128xf32>
    %104 = vector.shape_cast %83 : vector<8x128xf32> to vector<1x8x128xf32>
    tpu.vector_store %arg2[%c3_24, %101, %c0_25], %104 {strides = array<i32>} : memref<18x8x128xf32, #tpu.memory_space<vmem>>, vector<1x8x128xf32>,
    %c4 = arith.constant 4 : index
    %105 = arith.index_cast %1 : i32 to index
    %c0_26 = arith.constant 0 : index
    %106 = vector.load %arg2[%c4, %105, %c0_26] : memref<18x8x128xf32, #tpu.memory_space<vmem>>, vector<1x8x128xf32>
    %107 = vector.shape_cast %106 : vector<1x8x128xf32> to vector<8x128xf32>
    %108 = vector.shape_cast %84 : vector<8x128xf32> to vector<1x8x128xf32>
    tpu.vector_store %arg2[%c4, %105, %c0_26], %108 {strides = array<i32>} : memref<18x8x128xf32, #tpu.memory_space<vmem>>, vector<1x8x128xf32>,
    %c5 = arith.constant 5 : index
    %109 = arith.index_cast %1 : i32 to index
    %c0_27 = arith.constant 0 : index
    %110 = vector.load %arg2[%c5, %109, %c0_27] : memref<18x8x128xf32, #tpu.memory_space<vmem>>, vector<1x8x128xf32>
    %111 = vector.shape_cast %110 : vector<1x8x128xf32> to vector<8x128xf32>
    %112 = vector.shape_cast %85 : vector<8x128xf32> to vector<1x8x128xf32>
    tpu.vector_store %arg2[%c5, %109, %c0_27], %112 {strides = array<i32>} : memref<18x8x128xf32, #tpu.memory_space<vmem>>, vector<1x8x128xf32>,
    %c6 = arith.constant 6 : index
    %113 = arith.index_cast %1 : i32 to index
    %c0_28 = arith.constant 0 : index
    %114 = vector.load %arg2[%c6, %113, %c0_28] : memref<18x8x128xf32, #tpu.memory_space<vmem>>, vector<1x8x128xf32>
    %115 = vector.shape_cast %114 : vector<1x8x128xf32> to vector<8x128xf32>
    %116 = vector.shape_cast %86 : vector<8x128xf32> to vector<1x8x128xf32>
    tpu.vector_store %arg2[%c6, %113, %c0_28], %116 {strides = array<i32>} : memref<18x8x128xf32, #tpu.memory_space<vmem>>, vector<1x8x128xf32>,
    %c7 = arith.constant 7 : index
    %117 = arith.index_cast %1 : i32 to index
    %c0_29 = arith.constant 0 : index
    %118 = vector.load %arg2[%c7, %117, %c0_29] : memref<18x8x128xf32, #tpu.memory_space<vmem>>, vector<1x8x128xf32>
    %119 = vector.shape_cast %118 : vector<1x8x128xf32> to vector<8x128xf32>
    %120 = vector.shape_cast %87 : vector<8x128xf32> to vector<1x8x128xf32>
    tpu.vector_store %arg2[%c7, %117, %c0_29], %120 {strides = array<i32>} : memref<18x8x128xf32, #tpu.memory_space<vmem>>, vector<1x8x128xf32>,
    %c8 = arith.constant 8 : index
    %121 = arith.index_cast %1 : i32 to index
    %c0_30 = arith.constant 0 : index
    %122 = vector.load %arg2[%c8, %121, %c0_30] : memref<18x8x128xf32, #tpu.memory_space<vmem>>, vector<1x8x128xf32>
    %123 = vector.shape_cast %122 : vector<1x8x128xf32> to vector<8x128xf32>
    %124 = vector.shape_cast %88 : vector<8x128xf32> to vector<1x8x128xf32>
    tpu.vector_store %arg2[%c8, %121, %c0_30], %124 {strides = array<i32>} : memref<18x8x128xf32, #tpu.memory_space<vmem>>, vector<1x8x128xf32>,
    %125 = arith.mulf %80, %4 : vector<8x128xf32>
    %126 = arith.mulf %81, %7 : vector<8x128xf32>
    %127 = arith.addf %125, %126 : vector<8x128xf32>
    %128 = arith.mulf %82, %10 : vector<8x128xf32>
    %129 = arith.addf %127, %128 : vector<8x128xf32>
    %130 = arith.mulf %83, %4 : vector<8x128xf32>
    %131 = arith.mulf %84, %7 : vector<8x128xf32>
    %132 = arith.addf %130, %131 : vector<8x128xf32>
    %133 = arith.mulf %85, %10 : vector<8x128xf32>
    %134 = arith.addf %132, %133 : vector<8x128xf32>
    %135 = arith.mulf %86, %4 : vector<8x128xf32>
    %136 = arith.mulf %87, %7 : vector<8x128xf32>
    %137 = arith.addf %135, %136 : vector<8x128xf32>
    %138 = arith.mulf %88, %10 : vector<8x128xf32>
    %139 = arith.addf %137, %138 : vector<8x128xf32>
    %cst_31 = arith.constant -0.333333313 : f32
    %140 = vector.broadcast %cst_31 : f32 to vector<8x128xf32>
    %141 = arith.mulf %140, %129 : vector<8x128xf32>
    %cst_32 = arith.constant 0.666666686 : f32
    %142 = vector.broadcast %cst_32 : f32 to vector<8x128xf32>
    %143 = arith.mulf %142, %134 : vector<8x128xf32>
    %144 = arith.addf %141, %143 : vector<8x128xf32>
    %cst_33 = arith.constant 0.666666686 : f32
    %145 = vector.broadcast %cst_33 : f32 to vector<8x128xf32>
    %146 = arith.mulf %145, %139 : vector<8x128xf32>
    %147 = arith.addf %144, %146 : vector<8x128xf32>
    %cst_34 = arith.constant -0.666666686 : f32
    %148 = vector.broadcast %cst_34 : f32 to vector<8x128xf32>
    %149 = arith.mulf %148, %129 : vector<8x128xf32>
    %cst_35 = arith.constant 0.333333313 : f32
    %150 = vector.broadcast %cst_35 : f32 to vector<8x128xf32>
    %151 = arith.mulf %150, %134 : vector<8x128xf32>
    %152 = arith.addf %149, %151 : vector<8x128xf32>
    %cst_36 = arith.constant -0.666666686 : f32
    %153 = vector.broadcast %cst_36 : f32 to vector<8x128xf32>
    %154 = arith.mulf %153, %139 : vector<8x128xf32>
    %155 = arith.addf %152, %154 : vector<8x128xf32>
    %cst_37 = arith.constant -0.666666686 : f32
    %156 = vector.broadcast %cst_37 : f32 to vector<8x128xf32>
    %157 = arith.mulf %156, %129 : vector<8x128xf32>
    %cst_38 = arith.constant -0.666666686 : f32
    %158 = vector.broadcast %cst_38 : f32 to vector<8x128xf32>
    %159 = arith.mulf %158, %134 : vector<8x128xf32>
    %160 = arith.addf %157, %159 : vector<8x128xf32>
    %cst_39 = arith.constant 0.333333313 : f32
    %161 = vector.broadcast %cst_39 : f32 to vector<8x128xf32>
    %162 = arith.mulf %161, %139 : vector<8x128xf32>
    %163 = arith.addf %160, %162 : vector<8x128xf32>
    %164 = arith.mulf %80, %147 : vector<8x128xf32>
    %165 = arith.mulf %83, %155 : vector<8x128xf32>
    %166 = arith.addf %164, %165 : vector<8x128xf32>
    %167 = arith.mulf %86, %163 : vector<8x128xf32>
    %168 = arith.addf %166, %167 : vector<8x128xf32>
    %c9 = arith.constant 9 : index
    %169 = arith.index_cast %1 : i32 to index
    %c0_40 = arith.constant 0 : index
    %170 = vector.load %arg2[%c9, %169, %c0_40] : memref<18x8x128xf32, #tpu.memory_space<vmem>>, vector<1x8x128xf32>
    %171 = vector.shape_cast %170 : vector<1x8x128xf32> to vector<8x128xf32>
    %172 = vector.shape_cast %168 : vector<8x128xf32> to vector<1x8x128xf32>
    tpu.vector_store %arg2[%c9, %169, %c0_40], %172 {strides = array<i32>} : memref<18x8x128xf32, #tpu.memory_space<vmem>>, vector<1x8x128xf32>,
    %173 = arith.mulf %81, %147 : vector<8x128xf32>
    %174 = arith.mulf %84, %155 : vector<8x128xf32>
    %175 = arith.addf %173, %174 : vector<8x128xf32>
    %176 = arith.mulf %87, %163 : vector<8x128xf32>
    %177 = arith.addf %175, %176 : vector<8x128xf32>
    %c10 = arith.constant 10 : index
    %178 = arith.index_cast %1 : i32 to index
    %c0_41 = arith.constant 0 : index
    %179 = vector.load %arg2[%c10, %178, %c0_41] : memref<18x8x128xf32, #tpu.memory_space<vmem>>, vector<1x8x128xf32>
    %180 = vector.shape_cast %179 : vector<1x8x128xf32> to vector<8x128xf32>
    %181 = vector.shape_cast %177 : vector<8x128xf32> to vector<1x8x128xf32>
    tpu.vector_store %arg2[%c10, %178, %c0_41], %181 {strides = array<i32>} : memref<18x8x128xf32, #tpu.memory_space<vmem>>, vector<1x8x128xf32>,
    %182 = arith.mulf %82, %147 : vector<8x128xf32>
    %183 = arith.mulf %85, %155 : vector<8x128xf32>
    %184 = arith.addf %182, %183 : vector<8x128xf32>
    %185 = arith.mulf %88, %163 : vector<8x128xf32>
    %186 = arith.addf %184, %185 : vector<8x128xf32>
    %c11 = arith.constant 11 : index
    %187 = arith.index_cast %1 : i32 to index
    %c0_42 = arith.constant 0 : index
    %188 = vector.load %arg2[%c11, %187, %c0_42] : memref<18x8x128xf32, #tpu.memory_space<vmem>>, vector<1x8x128xf32>
    %189 = vector.shape_cast %188 : vector<1x8x128xf32> to vector<8x128xf32>
    %190 = vector.shape_cast %186 : vector<8x128xf32> to vector<1x8x128xf32>
    tpu.vector_store %arg2[%c11, %187, %c0_42], %190 {strides = array<i32>} : memref<18x8x128xf32, #tpu.memory_space<vmem>>, vector<1x8x128xf32>,
    %cst_43 = arith.constant 0.333333313 : f32
    %191 = vector.broadcast %cst_43 : f32 to vector<8x128xf32>
    %192 = arith.mulf %191, %129 : vector<8x128xf32>
    %cst_44 = arith.constant -0.666666686 : f32
    %193 = vector.broadcast %cst_44 : f32 to vector<8x128xf32>
    %194 = arith.mulf %193, %134 : vector<8x128xf32>
    %195 = arith.addf %192, %194 : vector<8x128xf32>
    %cst_45 = arith.constant -0.666666686 : f32
    %196 = vector.broadcast %cst_45 : f32 to vector<8x128xf32>
    %197 = arith.mulf %196, %139 : vector<8x128xf32>
    %198 = arith.addf %195, %197 : vector<8x128xf32>
    %cst_46 = arith.constant 0.666666686 : f32
    %199 = vector.broadcast %cst_46 : f32 to vector<8x128xf32>
    %200 = arith.mulf %199, %129 : vector<8x128xf32>
    %cst_47 = arith.constant -0.333333313 : f32
    %201 = vector.broadcast %cst_47 : f32 to vector<8x128xf32>
    %202 = arith.mulf %201, %134 : vector<8x128xf32>
    %203 = arith.addf %200, %202 : vector<8x128xf32>
    %cst_48 = arith.constant 0.666666686 : f32
    %204 = vector.broadcast %cst_48 : f32 to vector<8x128xf32>
    %205 = arith.mulf %204, %139 : vector<8x128xf32>
    %206 = arith.addf %203, %205 : vector<8x128xf32>
    %cst_49 = arith.constant -0.666666686 : f32
    %207 = vector.broadcast %cst_49 : f32 to vector<8x128xf32>
    %208 = arith.mulf %207, %129 : vector<8x128xf32>
    %cst_50 = arith.constant -0.666666686 : f32
    %209 = vector.broadcast %cst_50 : f32 to vector<8x128xf32>
    %210 = arith.mulf %209, %134 : vector<8x128xf32>
    %211 = arith.addf %208, %210 : vector<8x128xf32>
    %cst_51 = arith.constant 0.333333313 : f32
    %212 = vector.broadcast %cst_51 : f32 to vector<8x128xf32>
    %213 = arith.mulf %212, %139 : vector<8x128xf32>
    %214 = arith.addf %211, %213 : vector<8x128xf32>
    %215 = arith.mulf %80, %198 : vector<8x128xf32>
    %216 = arith.mulf %83, %206 : vector<8x128xf32>
    %217 = arith.addf %215, %216 : vector<8x128xf32>
    %218 = arith.mulf %86, %214 : vector<8x128xf32>
    %219 = arith.addf %217, %218 : vector<8x128xf32>
    %c12 = arith.constant 12 : index
    %220 = arith.index_cast %1 : i32 to index
    %c0_52 = arith.constant 0 : index
    %221 = vector.load %arg2[%c12, %220, %c0_52] : memref<18x8x128xf32, #tpu.memory_space<vmem>>, vector<1x8x128xf32>
    %222 = vector.shape_cast %221 : vector<1x8x128xf32> to vector<8x128xf32>
    %223 = vector.shape_cast %219 : vector<8x128xf32> to vector<1x8x128xf32>
    tpu.vector_store %arg2[%c12, %220, %c0_52], %223 {strides = array<i32>} : memref<18x8x128xf32, #tpu.memory_space<vmem>>, vector<1x8x128xf32>,
    %224 = arith.mulf %81, %198 : vector<8x128xf32>
    %225 = arith.mulf %84, %206 : vector<8x128xf32>
    %226 = arith.addf %224, %225 : vector<8x128xf32>
    %227 = arith.mulf %87, %214 : vector<8x128xf32>
    %228 = arith.addf %226, %227 : vector<8x128xf32>
    %c13 = arith.constant 13 : index
    %229 = arith.index_cast %1 : i32 to index
    %c0_53 = arith.constant 0 : index
    %230 = vector.load %arg2[%c13, %229, %c0_53] : memref<18x8x128xf32, #tpu.memory_space<vmem>>, vector<1x8x128xf32>
    %231 = vector.shape_cast %230 : vector<1x8x128xf32> to vector<8x128xf32>
    %232 = vector.shape_cast %228 : vector<8x128xf32> to vector<1x8x128xf32>
    tpu.vector_store %arg2[%c13, %229, %c0_53], %232 {strides = array<i32>} : memref<18x8x128xf32, #tpu.memory_space<vmem>>, vector<1x8x128xf32>,
    %233 = arith.mulf %82, %198 : vector<8x128xf32>
    %234 = arith.mulf %85, %206 : vector<8x128xf32>
    %235 = arith.addf %233, %234 : vector<8x128xf32>
    %236 = arith.mulf %88, %214 : vector<8x128xf32>
    %237 = arith.addf %235, %236 : vector<8x128xf32>
    %c14 = arith.constant 14 : index
    %238 = arith.index_cast %1 : i32 to index
    %c0_54 = arith.constant 0 : index
    %239 = vector.load %arg2[%c14, %238, %c0_54] : memref<18x8x128xf32, #tpu.memory_space<vmem>>, vector<1x8x128xf32>
    %240 = vector.shape_cast %239 : vector<1x8x128xf32> to vector<8x128xf32>
    %241 = vector.shape_cast %237 : vector<8x128xf32> to vector<1x8x128xf32>
    tpu.vector_store %arg2[%c14, %238, %c0_54], %241 {strides = array<i32>} : memref<18x8x128xf32, #tpu.memory_space<vmem>>, vector<1x8x128xf32>,
    %cst_55 = arith.constant 0.333333313 : f32
    %242 = vector.broadcast %cst_55 : f32 to vector<8x128xf32>
    %243 = arith.mulf %242, %129 : vector<8x128xf32>
    %cst_56 = arith.constant -0.666666686 : f32
    %244 = vector.broadcast %cst_56 : f32 to vector<8x128xf32>
    %245 = arith.mulf %244, %134 : vector<8x128xf32>
    %246 = arith.addf %243, %245 : vector<8x128xf32>
    %cst_57 = arith.constant -0.666666686 : f32
    %247 = vector.broadcast %cst_57 : f32 to vector<8x128xf32>
    %248 = arith.mulf %247, %139 : vector<8x128xf32>
    %249 = arith.addf %246, %248 : vector<8x128xf32>
    %cst_58 = arith.constant -0.666666686 : f32
    %250 = vector.broadcast %cst_58 : f32 to vector<8x128xf32>
    %251 = arith.mulf %250, %129 : vector<8x128xf32>
    %cst_59 = arith.constant 0.333333313 : f32
    %252 = vector.broadcast %cst_59 : f32 to vector<8x128xf32>
    %253 = arith.mulf %252, %134 : vector<8x128xf32>
    %254 = arith.addf %251, %253 : vector<8x128xf32>
    %cst_60 = arith.constant -0.666666686 : f32
    %255 = vector.broadcast %cst_60 : f32 to vector<8x128xf32>
    %256 = arith.mulf %255, %139 : vector<8x128xf32>
    %257 = arith.addf %254, %256 : vector<8x128xf32>
    %cst_61 = arith.constant 0.666666686 : f32
    %258 = vector.broadcast %cst_61 : f32 to vector<8x128xf32>
    %259 = arith.mulf %258, %129 : vector<8x128xf32>
    %cst_62 = arith.constant 0.666666686 : f32
    %260 = vector.broadcast %cst_62 : f32 to vector<8x128xf32>
    %261 = arith.mulf %260, %134 : vector<8x128xf32>
    %262 = arith.addf %259, %261 : vector<8x128xf32>
    %cst_63 = arith.constant -0.333333313 : f32
    %263 = vector.broadcast %cst_63 : f32 to vector<8x128xf32>
    %264 = arith.mulf %263, %139 : vector<8x128xf32>
    %265 = arith.addf %262, %264 : vector<8x128xf32>
    %266 = arith.mulf %80, %249 : vector<8x128xf32>
    %267 = arith.mulf %83, %257 : vector<8x128xf32>
    %268 = arith.addf %266, %267 : vector<8x128xf32>
    %269 = arith.mulf %86, %265 : vector<8x128xf32>
    %270 = arith.addf %268, %269 : vector<8x128xf32>
    %c15 = arith.constant 15 : index
    %271 = arith.index_cast %1 : i32 to index
    %c0_64 = arith.constant 0 : index
    %272 = vector.load %arg2[%c15, %271, %c0_64] : memref<18x8x128xf32, #tpu.memory_space<vmem>>, vector<1x8x128xf32>
    %273 = vector.shape_cast %272 : vector<1x8x128xf32> to vector<8x128xf32>
    %274 = vector.shape_cast %270 : vector<8x128xf32> to vector<1x8x128xf32>
    tpu.vector_store %arg2[%c15, %271, %c0_64], %274 {strides = array<i32>} : memref<18x8x128xf32, #tpu.memory_space<vmem>>, vector<1x8x128xf32>,
    %275 = arith.mulf %81, %249 : vector<8x128xf32>
    %276 = arith.mulf %84, %257 : vector<8x128xf32>
    %277 = arith.addf %275, %276 : vector<8x128xf32>
    %278 = arith.mulf %87, %265 : vector<8x128xf32>
    %279 = arith.addf %277, %278 : vector<8x128xf32>
    %c16 = arith.constant 16 : index
    %280 = arith.index_cast %1 : i32 to index
    %c0_65 = arith.constant 0 : index
    %281 = vector.load %arg2[%c16, %280, %c0_65] : memref<18x8x128xf32, #tpu.memory_space<vmem>>, vector<1x8x128xf32>
    %282 = vector.shape_cast %281 : vector<1x8x128xf32> to vector<8x128xf32>
    %283 = vector.shape_cast %279 : vector<8x128xf32> to vector<1x8x128xf32>
    tpu.vector_store %arg2[%c16, %280, %c0_65], %283 {strides = array<i32>} : memref<18x8x128xf32, #tpu.memory_space<vmem>>, vector<1x8x128xf32>,
    %284 = arith.mulf %82, %249 : vector<8x128xf32>
    %285 = arith.mulf %85, %257 : vector<8x128xf32>
    %286 = arith.addf %284, %285 : vector<8x128xf32>
    %287 = arith.mulf %88, %265 : vector<8x128xf32>
    %288 = arith.addf %286, %287 : vector<8x128xf32>
    %c17 = arith.constant 17 : index
    %289 = arith.index_cast %1 : i32 to index
    %c0_66 = arith.constant 0 : index
    %290 = vector.load %arg2[%c17, %289, %c0_66] : memref<18x8x128xf32, #tpu.memory_space<vmem>>, vector<1x8x128xf32>
    %291 = vector.shape_cast %290 : vector<1x8x128xf32> to vector<8x128xf32>
    %292 = vector.shape_cast %288 : vector<8x128xf32> to vector<1x8x128xf32>
    tpu.vector_store %arg2[%c17, %289, %c0_66], %292 {strides = array<i32>} : memref<18x8x128xf32, #tpu.memory_space<vmem>>, vector<1x8x128xf32>,
    %c1_i32 = arith.constant 1 : i32
    return
  }
  func.func @transform_0(%arg0: i32) -> (i32, i32, i32) {
    %c0_i32 = arith.constant 0 : i32
    %c0_i32_0 = arith.constant 0 : i32
    %c0_i32_1 = arith.constant 0 : i32
    return %c0_i32, %arg0, %c0_i32_0 : i32, i32, i32
  }
  func.func @transform_1(%arg0: i32) -> (i32, i32, i32) {
    %c0_i32 = arith.constant 0 : i32
    %c0_i32_0 = arith.constant 0 : i32
    %c0_i32_1 = arith.constant 0 : i32
    return %c0_i32, %arg0, %c0_i32_0 : i32, i32, i32
  }
}

</mosaic_0001>

<bundles_post_ra>
// kernel: tpu_custom_call.1
= control target key start
LH: loop header
LB: loop body
LE: loop exit
PB: predicated region body
PF: predicated region fallthrough
CT: control target
= control target key end

     0   :  { %6 = vsyncpa [#allocation3], 0  ;;  %s438_s0 = inlined_call_operand.hbm [shape: f32[4,8,128], index: 0, kind: input, shape index: {}]   ;;  %s439_s1 = inlined_call_operand.hbm [shape: f32[18,8,128], index: 1, kind: output, shape index: {}]  }
   0x1   :  { %7 = vsyncpa [#allocation4], 0  ;;  %s12_s8 = sshll.u32 %s438_s0, 4  ;;  %s340_s9 = smov [#allocation2]   ;;  %s13_s8 = int_to_ptr.hbm [resolvable:$true] %s12_s8 }
   0x2   :  { %s14_s10 = sshll.u32 %s340_s9, 4  ;;  %s341_s11 = smov 128   ;;  %s15_s10 = int_to_ptr.vmem [resolvable:$true] %s14_s10 }
   0x3   :  { %s342_s12 = smov 8  }
   0x4   :  { %20 = dma.hbm_to_vmem [thread:$0]  %s13_s8, 512, %s15_s10, [#allocation3], %s341_s11, %s341_s11, %s342_s12  }
   0x5   :  { %336 = dma.done.wait [#allocation3], 512  }
   0x6   :  { %337 = vsyncadd [#allocation3], 4294966784  ;;  %v34_v0 = vld [vmem:[#allocation2 + $0x18] sm:$0xff]  ;;  %v360_v2 = vld [vmem:[#allocation2] sm:$0xff]  ;;  %s343_s0 = smov [#allocation5]   ;;  %s245_s16 = sshll.u32 %s439_s1, 4  ;;  %s246_s16 = int_to_ptr.hbm [resolvable:$true] %s245_s16 }
   0x7   :  { %v35_v1 = vadd.f32 1e-12, %v34_v0  ;;  %v362_v3 = vld [vmem:[#allocation2 + $0x8] sm:$0xff]  ;;  %v364_v4 = vld [vmem:[#allocation2 + $0x10] sm:$0xff]  ;;  %s243_s13 = sshll.u32 %s343_s0, 4  ;;  %s244_s13 = int_to_ptr.vmem [resolvable:$true] %s243_s13 }
   0x9   :  { %282 = vrcp.f32 %v35_v1 }
   0xf   :  { %v283_v5 = vpop.eup %282 }
  0x10   :  { %v37_v6 = vmul.f32 %v283_v5, %v360_v2  ;;  %v38_v7 = vmul.f32 %v283_v5, %v362_v3  ;;  %v39_v8 = vmul.f32 %v283_v5, %v364_v4 }
  0x12   :  { %v40_v9 = vmul.f32 %v37_v6, %v37_v6  ;;  %v41_v10 = vmul.f32 %v38_v7, %v38_v7  ;;  %v43_v11 = vmul.f32 %v39_v8, %v39_v8 }
  0x14   :  { %v42_v12 = vadd.f32 %v41_v10, %v40_v9 }
  0x16   :  { %v44_v13 = vadd.f32 %v43_v11, %v42_v12 }
  0x18   :  { %v45_v14 = vmax.f32 %v44_v13, 1e-24 }
  0x1a   :  { %284 = vrsqrt.f32 %v45_v14  ;;  %vm52_vm0 = vweird.f32 %v45_v14 }
  0x20   :  { %v285_v15 = vpop.eup %284 }
  0x21   :  { %v47_v16 = vmul.f32 %v285_v15, %v45_v14  ;;  %vm53_vm1 = vweird.f32 %v285_v15 }
  0x22   :  { %vm54_vm2 = vmor %vm52_vm0, %vm53_vm1 }
  0x23   :  { %v48_v17 = vmul.f32 %v285_v15, %v47_v16 }
  0x25   :  { %v49_v18 = vmul.f32 0.5, %v48_v17 }
  0x27   :  { %v50_v19 = vsub.f32 1.5, %v49_v18 }
  0x29   :  { %v51_v20 = vmul.f32 %v285_v15, %v50_v19 }
  0x2b   :  { %v55_v21 = vsel %vm54_vm2, %v285_v15, %v51_v20 }
  0x2c   :  { %v56_v22 = vmul.f32 %v55_v21, %v37_v6  ;;  %v57_v23 = vmul.f32 %v55_v21, %v38_v7  ;;  %v58_v24 = vmul.f32 %v55_v21, %v39_v8 }
  0x2e   :  { %v59_v25 = vadd.f32 0.57735026, %v56_v22  ;;  %v60_v26 = vadd.f32 0.57735026, %v57_v23  ;;  %v61_v27 = vadd.f32 0.57735026, %v58_v24 }
  0x30   :  { %v62_v28 = vmul.f32 %v59_v25, %v59_v25  ;;  %v63_v29 = vmul.f32 %v60_v26, %v60_v26  ;;  %v65_v30 = vmul.f32 %v61_v27, %v61_v27  ;;  %v88_v39 = vmul.f32 %v60_v26, %v59_v25 }
  0x31   :  { %v91_v40 = vmul.f32 %v61_v27, %v59_v25  ;;  %v94_v42 = vmul.f32 %v61_v27, %v60_v26 }
  0x32   :  { %v64_v31 = vadd.f32 %v63_v29, %v62_v28  ;;  %v89_v45 = vsub.f32 0.0, %v88_v39 }
  0x33   :  { %v92_v46 = vsub.f32 0.0, %v91_v40  ;;  %v95_v48 = vsub.f32 0.0, %v94_v42 }
  0x34   :  { %v66_v32 = vadd.f32 %v65_v30, %v64_v31 }
  0x36   :  { %286 = vrcp.f32 %v66_v32  ;;  %v78_v35 = vand.u32 2147483648, %v66_v32  ;;  %vm72_vm3 = vweird.f32 %v66_v32  ;;  %v76_v37 = vand.u32 2147483647, %v66_v32 }
  0x38   :  { %v79_v41 = vor.u32 1.1754944e-38, %v78_v35  ;;  %vm77_vm6 = vcmp.eq.f32.partialorder %v76_v37, 8.507059e+37 }
  0x3c   :  { %v287_v33 = vpop.eup %286 }
  0x3d   :  { %v68_v34 = vmul.f32 %v287_v33, %v66_v32  ;;  %vm73_vm4 = vweird.f32 %v287_v33 }
  0x3e   :  { %vm74_vm5 = vmor %vm72_vm3, %vm73_vm4 }
  0x3f   :  { %v69_v36 = vsub.f32 1.0, %v68_v34 }
  0x41   :  { %v70_v38 = vmul.f32 %v287_v33, %v69_v36 }
  0x43   :  { %v71_v43 = vadd.f32 %v287_v33, %v70_v38 }
  0x45   :  { %v75_v44 = vsel %vm74_vm5, %v287_v33, %v71_v43 }
  0x46   :  { %v80_v47 = vsel %vm77_vm6, %v79_v41, %v75_v44 }
  0x47   :  { %v81_v49 = vmul.f32 2.0, %v80_v47 }
  0x49   :  { %v82_v50 = vmul.f32 %v81_v49, %v62_v28  ;;  %v90_v51 = vmul.f32 %v89_v45, %v81_v49  ;;  %v93_v52 = vmul.f32 %v92_v46, %v81_v49  ;;  %v84_v53 = vmul.f32 %v81_v49, %v63_v29 }
  0x4a   :  { %v96_v54 = vmul.f32 %v95_v48, %v81_v49  ;;  %v86_v55 = vmul.f32 %v81_v49, %v65_v30 }
  0x4b   :  { %v83_v56 = vsub.f32 1.0, %v82_v50  ;;  %v85_v57 = vsub.f32 1.0, %v84_v53 }
  0x4c   :  { %v87_v58 = vsub.f32 1.0, %v86_v55  ;;  %v103_v59 = vadd.f32 %v96_v54, %v93_v52 }
  0x4d   :  { %v97_v60 = vadd.f32 %v90_v51, %v83_v56  ;;  %v100_v61 = vadd.f32 %v90_v51, %v85_v57 }
  0x4e   :  { %v104_v62 = vadd.f32 %v103_v59, %v87_v58 }
  0x4f   :  { %v98_v63 = vadd.f32 %v97_v60, %v93_v52  ;;  %v101_v0 = vadd.f32 %v100_v61, %v96_v54 }
  0x50   :  { %v105_v1 = vmul.f32 0.6666667, %v104_v62 }
  0x51   :  { %v99_v5 = vmul.f32 0.6666667, %v98_v63  ;;  %v102_v6 = vmul.f32 0.6666667, %v101_v0 }
  0x52   :  { %v369_v7 = vsub.f32 %v93_v52, %v105_v1  ;;  %v371_v8 = vsub.f32 %v96_v54, %v105_v1  ;;  %v373_v9 = vsub.f32 %v87_v58, %v105_v1 }
  0x53   :  { %v375_v10 = vsub.f32 %v83_v56, %v99_v5  ;;  %v377_v11 = vsub.f32 %v90_v51, %v102_v6  ;;  %v379_v12 = vsub.f32 %v90_v51, %v99_v5  ;;  %v381_v13 = vsub.f32 %v85_v57, %v102_v6 }
  0x54   :  { %119 = vst [vmem:[#allocation5 + $0x10] sm:$0xff] %v369_v7  ;;  %v140_v14 = vmul.f32 %v369_v7, %v364_v4  ;;  %v145_v15 = vmul.f32 %v371_v8, %v364_v4  ;;  %v388_v16 = vsub.f32 %v93_v52, %v99_v5  ;;  %v390_v17 = vsub.f32 %v96_v54, %v102_v6 }
  0x55   :  { %115 = vst [vmem:[#allocation5] sm:$0xff] %v375_v10  ;;  %v137_v18 = vmul.f32 %v375_v10, %v360_v2  ;;  %v138_v19 = vmul.f32 %v377_v11, %v362_v3  ;;  %v142_v20 = vmul.f32 %v379_v12, %v360_v2  ;;  %v143_v21 = vmul.f32 %v381_v13, %v362_v3 }
  0x56   :  { %117 = vst [vmem:[#allocation5 + $0x8] sm:$0xff] %v377_v11  ;;  %v147_v22 = vmul.f32 %v388_v16, %v360_v2  ;;  %v148_v23 = vmul.f32 %v390_v17, %v362_v3  ;;  %v150_v24 = vmul.f32 %v373_v9, %v364_v4 }
  0x57   :  { %v139_v25 = vadd.f32 %v138_v19, %v137_v18  ;;  %121 = vst [vmem:[#allocation5 + $0x18] sm:$0xff] %v379_v12  ;;  %v144_v26 = vadd.f32 %v143_v21, %v142_v20 }
  0x58   :  { %124 = vst [vmem:[#allocation5 + $0x20] sm:$0xff] %v381_v13  ;;  %v149_v27 = vadd.f32 %v148_v23, %v147_v22 }
  0x59   :  { %v141_v28 = vadd.f32 %v140_v14, %v139_v25  ;;  %127 = vst [vmem:[#allocation5 + $0x28] sm:$0xff] %v371_v8  ;;  %v146_v29 = vadd.f32 %v145_v15, %v144_v26 }
  0x5a   :  { %130 = vst [vmem:[#allocation5 + $0x30] sm:$0xff] %v388_v16  ;;  %v151_v2 = vadd.f32 %v150_v24, %v149_v27 }
  0x5b   :  { %133 = vst [vmem:[#allocation5 + $0x38] sm:$0xff] %v390_v17  ;;  %v152_v3 = vmul.f32 -0.3333333, %v141_v28  ;;  %v153_v30 = vmul.f32 0.6666667, %v146_v29 }
  0x5c   :  { %136 = vst [vmem:[#allocation5 + $0x40] sm:$0xff] %v373_v9  ;;  %v155_v4 = vmul.f32 0.6666667, %v151_v2  ;;  %v157_v31 = vmul.f32 -0.6666667, %v141_v28 }
  0x5d   :  { %v154_v32 = vadd.f32 %v153_v30, %v152_v3  ;;  %v158_v33 = vmul.f32 0.3333333, %v146_v29  ;;  %v160_v34 = vmul.f32 -0.6666667, %v151_v2  ;;  %v162_v35 = vmul.f32 -0.6666667, %v146_v29 }
  0x5e   :  { %v164_v36 = vmul.f32 0.3333333, %v151_v2  ;;  %v190_v37 = vmul.f32 0.3333333, %v141_v28  ;;  %v193_v38 = vmul.f32 0.6666667, %v141_v28 }
  0x5f   :  { %v156_v39 = vadd.f32 %v155_v4, %v154_v32  ;;  %v159_v40 = vadd.f32 %v158_v33, %v157_v31  ;;  %v163_v41 = vadd.f32 %v162_v35, %v157_v31  ;;  %v194_v42 = vmul.f32 -0.3333333, %v146_v29 }
  0x60   :  { %v191_v43 = vadd.f32 %v190_v37, %v162_v35  ;;  %v218_v44 = vadd.f32 %v193_v38, %v153_v30  ;;  %v219_v45 = vmul.f32 -0.3333333, %v151_v2 }
  0x61   :  { %v161_v46 = vadd.f32 %v160_v34, %v159_v40  ;;  %v165_v47 = vadd.f32 %v164_v36, %v163_v41  ;;  %v166_v48 = vmul.f32 %v156_v39, %v375_v10  ;;  %v174_v49 = vmul.f32 %v156_v39, %v377_v11 }
  0x62   :  { %v182_v50 = vmul.f32 %v156_v39, %v369_v7  ;;  %v192_v51 = vadd.f32 %v191_v43, %v160_v34  ;;  %v195_v52 = vadd.f32 %v194_v42, %v193_v38  ;;  %v220_v53 = vadd.f32 %v219_v45, %v218_v44 }
  0x63   :  { %v167_v54 = vmul.f32 %v161_v46, %v379_v12  ;;  %v169_v55 = vmul.f32 %v165_v47, %v388_v16  ;;  %v175_v56 = vmul.f32 %v161_v46, %v381_v13  ;;  %v177_v57 = vmul.f32 %v165_v47, %v390_v17 }
  0x64   :  { %v183_v58 = vmul.f32 %v161_v46, %v371_v8  ;;  %v185_v59 = vmul.f32 %v165_v47, %v373_v9  ;;  %v196_v60 = vadd.f32 %v195_v52, %v155_v4  ;;  %v197_v61 = vmul.f32 %v192_v51, %v375_v10 }
  0x65   :  { %v168_v62 = vadd.f32 %v167_v54, %v166_v48  ;;  %v176_v63 = vadd.f32 %v175_v56, %v174_v49  ;;  %v204_v0 = vmul.f32 %v192_v51, %v377_v11  ;;  %v211_v1 = vmul.f32 %v192_v51, %v369_v7 }
  0x66   :  { %v184_v5 = vadd.f32 %v183_v58, %v182_v50  ;;  %v198_v6 = vmul.f32 %v196_v60, %v379_v12  ;;  %v205_v14 = vmul.f32 %v196_v60, %v381_v13  ;;  %v212_v15 = vmul.f32 %v196_v60, %v371_v8 }
  0x67   :  { %v170_v18 = vadd.f32 %v169_v55, %v168_v62  ;;  %v178_v19 = vadd.f32 %v177_v57, %v176_v63  ;;  %v221_v20 = vadd.f32 %v197_v61, %v167_v54  ;;  %v222_v21 = vmul.f32 %v220_v53, %v388_v16 }
  0x68   :  { %v186_v22 = vadd.f32 %v185_v59, %v184_v5  ;;  %v199_v10 = vadd.f32 %v198_v6, %v197_v61  ;;  %v206_v23 = vadd.f32 %v205_v14, %v204_v0  ;;  %v213_v24 = vadd.f32 %v212_v15, %v211_v1 }
  0x69   :  { %173 = vst [vmem:[#allocation5 + $0x48] sm:$0xff] %v170_v18  ;;  %v227_v11 = vadd.f32 %v204_v0, %v175_v56  ;;  %v228_v7 = vmul.f32 %v220_v53, %v390_v17  ;;  %v233_v25 = vadd.f32 %v211_v1, %v183_v58  ;;  %v234_v8 = vmul.f32 %v220_v53, %v373_v9 }
  0x6a   :  { %181 = vst [vmem:[#allocation5 + $0x50] sm:$0xff] %v178_v19  ;;  %v200_v12 = vadd.f32 %v199_v10, %v169_v55  ;;  %v207_v26 = vadd.f32 %v206_v23, %v177_v57  ;;  %v214_v13 = vadd.f32 %v213_v24, %v185_v59  ;;  %v223_v27 = vadd.f32 %v222_v21, %v221_v20 }
  0x6b   :  { %189 = vst [vmem:[#allocation5 + $0x58] sm:$0xff] %v186_v22  ;;  %v229_v28 = vadd.f32 %v228_v7, %v227_v11  ;;  %v235_v16 = vadd.f32 %v234_v8, %v233_v25 }
  0x6c   :  { %203 = vst [vmem:[#allocation5 + $0x60] sm:$0xff] %v200_v12 }
  0x6d   :  { %210 = vst [vmem:[#allocation5 + $0x68] sm:$0xff] %v207_v26 }
  0x6e   :  { %217 = vst [vmem:[#allocation5 + $0x70] sm:$0xff] %v214_v13 }
  0x6f   :  { %226 = vst [vmem:[#allocation5 + $0x78] sm:$0xff] %v223_v27 }
  0x70   :  { %232 = vst [vmem:[#allocation5 + $0x80] sm:$0xff] %v229_v28 }
  0x71   :  { %238 = vst [vmem:[#allocation5 + $0x88] sm:$0xff] %v235_v16 }
  0x72   :  { %251 = dma.vmem_to_hbm [thread:$0]  %s244_s13, 2304, %s246_s16, [#allocation4], %s341_s11, %s341_s11, %s342_s12  }
  0x73   :  { %338 = dma.done.wait [#allocation4], 2304  }
  0x74   :  { %339 = vsyncadd [#allocation4], 4294964992 }
  0x75   :  { %256 = vsyncpa [#allocation3], 1 }
  0x76   :  { %257 = vsyncpa [#allocation4], 1 }

</bundles_post_ra>
